<compile_context>
chip_gen: v7x
topology: tpu7x:2x2x1
jax: 0.10.0
libtpu: 0.0.40
codegen_flags: <defaults>
</compile_context>

<pallas_src>
import functools

import jax
import jax.numpy as jnp
from jax.experimental import pallas as pl
from jax.experimental.pallas import tpu as pltpu

_LANES = 128                    # lane width of a vreg
_SUBS = 8                       # sublane count of an f32 vreg
_TILE_MIN = _SUBS * _LANES      # 1024 rows: smallest legal batch tile
_TILE_MAX = 64 * _TILE_MIN      # 65536 rows: ~3.5 MiB double-buffered VMEM


def _round_up(x, m):
    return -(-x // m) * m


def _pick_tile_rows(batch):
    """Adaptive batch-tile size (rows per grid step)."""
    rounded = _round_up(batch, _TILE_MIN)
    if rounded <= _TILE_MAX:
        return rounded                     # single grid step
    # Large batches: big tiles amortize the ~0.35us fixed per-step cost, but
    # keep >=4 grid steps when possible so the "parallel" grid axis can feed
    # both v7x TensorCores.
    if _round_up(batch, _TILE_MAX) // _TILE_MAX >= 4:
        return _TILE_MAX
    half = _TILE_MAX // 2
    if _round_up(batch, half) // half >= 4:
        return half
    return _TILE_MAX


def _lie_se3_kernel(uv_ref, out_ref, *, translation_scale, rotation_scale, eps):
    # uv_ref : (3, S, 128) -- [x; y; yaw] for tile_rows batch rows, lane-dense
    # out_ref: (4, S, 128) -- [r_diag; r_off; t0; t1] (only varying components)
    ux = uv_ref[0] * translation_scale      # (S, 128)
    uy = uv_ref[1] * translation_scale      # (S, 128)
    w = uv_ref[2] * rotation_scale          # omega_z, (S, 128)

    theta_sqr = w * w
    theta = jnp.abs(w)                      # == sqrt(w*w), VPU bit-op not EUP

    inv_t2 = 1.0 / (theta_sqr + eps)        # shared exact reciprocal
    sin_div = jnp.sin(theta) / (theta + eps)                 # A
    one_minus_cos_div = (1.0 - jnp.cos(theta)) * inv_t2      # B
    one_minus_a_div = (1.0 - sin_div) * inv_t2                # C

    # omega_skew = [[0,-w,0],[w,0,0],[0,0,0]], omega_skew^2 = diag(-w^2,-w^2,0)
    # R = I + A*skew + B*skew^2  -> 2x2 block [[r_diag,-r_off],[r_off,r_diag]]
    r_diag = 1.0 - one_minus_cos_div * theta_sqr
    r_off = sin_div * w

    # V = I + B*skew + C*skew^2 ; t = V @ [ux, uy, 0]^T
    v_diag = 1.0 - one_minus_a_div * theta_sqr
    v_off = one_minus_cos_div * w
    t0 = v_diag * ux - v_off * uy
    t1 = v_off * ux + v_diag * uy

    out_ref[0] = r_diag
    out_ref[1] = r_off
    out_ref[2] = t0
    out_ref[3] = t1


def lie_se3(uv, translation_scale=1.0, rotation_scale=0.1, eps=1e-5,
            tile_rows=None):
    """uv: (B, 3) float32 [x, y, p_yaw] -> (B, 4, 4) float32 SE(3) matrices."""
    uv = jnp.asarray(uv, jnp.float32)
    B = uv.shape[0]

    if tile_rows is None:
        tile_rows = _pick_tile_rows(B)
    assert tile_rows % _TILE_MIN == 0, "tile_rows must be a multiple of 8*128"
    s_tile = tile_rows // _LANES

    n_tiles = pl.cdiv(B, tile_rows)
    b_pad = n_tiles * tile_rows
    if b_pad != B:
        # Zero padding is numerically safe (eps keeps denominators > 0).
        uv = jnp.pad(uv, ((0, b_pad - B), (0, 0)))
    s_total = b_pad // _LANES

    # Lane-dense SoA input: (B_pad, 3) -> (3, B_pad/128, 128); batch row b
    # lives at [:, b // 128, b % 128]. (Small 24 B/row relayout pass.)
    uv_soa = uv.T.reshape(3, s_total, _LANES)

    kernel = functools.partial(
        _lie_se3_kernel,
        translation_scale=float(translation_scale),
        rotation_scale=float(rotation_scale),
        eps=float(eps),
    )

    comp = pl.pallas_call(
        kernel,
        out_shape=jax.ShapeDtypeStruct((4, s_total, _LANES), jnp.float32),
        grid=(n_tiles,),
        in_specs=[pl.BlockSpec((3, s_tile, _LANES), lambda i: (0, i, 0))],
        out_specs=pl.BlockSpec((4, s_tile, _LANES), lambda i: (0, i, 0)),
        compiler_params=pltpu.CompilerParams(
            dimension_semantics=("parallel",)),
    )(uv_soa)

    # Final (B, 4, 4) assembly in one fused XLA pass: reads the 4 varying
    # component planes (16 B/row), injects constants / negation for free and
    # writes the unavoidable 64 B/row row-major result.
    comp = comp.reshape(4, b_pad)[:, :B]
    r_diag, r_off, t0, t1 = comp[0], comp[1], comp[2], comp[3]
    zeros = jnp.zeros_like(r_diag)
    ones = jnp.ones_like(r_diag)
    flat = jnp.stack([
        r_diag, -r_off, zeros, t0,
        r_off,  r_diag, zeros, t1,
        zeros,  zeros,  ones,  zeros,
        zeros,  zeros,  zeros, ones,
    ], axis=-1)                              # (B, 16)
    return flat.reshape(B, 4, 4)


def _lie_se3_ref(uv, translation_scale=1.0, rotation_scale=0.1, eps=1e-5):
    """Pure-JAX reference mirroring the PyTorch per-sample loop."""
    uv = jnp.asarray(uv, jnp.float32)
    B = uv.shape[0]
    out = jnp.zeros((B, 4, 4), jnp.float32)
    for b in range(B):
        w = uv[b, 2] * rotation_scale
        skew = jnp.array([[0.0, -w, 0.0], [w, 0.0, 0.0], [0.0, 0.0, 0.0]],
                         jnp.float32)
        u = jnp.array([[uv[b, 0] * translation_scale],
                       [uv[b, 1] * translation_scale],
                       [0.0]], jnp.float32)
        skew2 = skew @ skew
        th2 = w * w
        th = jnp.sqrt(th2)
        A = jnp.sin(th) / (th + eps)
        Bc = (1.0 - jnp.cos(th)) / (th2 + eps)
        C = (1.0 - A) / (th2 + eps)
        R = jnp.eye(3) + skew * A + skew2 * Bc
        V = jnp.eye(3) + skew * Bc + skew2 * C
        t = (V @ u)[:, 0]
        out = out.at[b, :3, :3].set(R)
        out = out.at[b, :3, 3].set(t)
        out = out.at[b, 3, 3].set(1.0)
    return out


if __name__ == "__main__":
    key = jax.random.PRNGKey(0)
    B = 2
    uv = jax.random.normal(key, (B, 3), dtype=jnp.float32)

    result = lie_se3(uv)
    jax.block_until_ready(result)

    ref = _lie_se3_ref(uv)
    assert result.shape == (B, 4, 4)
    assert jnp.allclose(result, ref, atol=1e-5, rtol=1e-5), (result, ref)
    print("KERNEL_OK")
</pallas_src>

<mosaic_0001>
module attributes {stable_mosaic.version = 11 : i64} {
  func.func @_lie_se3_kernel(%arg0: i32, %arg1: memref<3x8x128xf32, #tpu.memory_space<vmem>>, %arg2: memref<4x8x128xf32, #tpu.memory_space<vmem>>) attributes {dimension_semantics = [#tpu.dimension_semantics<parallel>], iteration_bounds = array<i64: 1>, scalar_prefetch = 0 : i64, scratch_operands = 0 : i64, tpu.core_type = #tpu.core_type<tc>, window_params = [{transform_indices = @transform_0, window_bounds = array<i64: 3, 8, 128>}, {transform_indices = @transform_1, window_bounds = array<i64: 4, 8, 128>}]} {
    %c0 = arith.constant 0 : index
    %c0_0 = arith.constant 0 : index
    %c0_1 = arith.constant 0 : index
    %0 = vector.load %arg1[%c0, %c0_0, %c0_1] : memref<3x8x128xf32, #tpu.memory_space<vmem>>, vector<1x8x128xf32>
    %1 = vector.shape_cast %0 : vector<1x8x128xf32> to vector<8x128xf32>
    %cst = arith.constant 1.000000e+00 : f32
    %2 = vector.broadcast %cst : f32 to vector<8x128xf32>
    %3 = arith.mulf %1, %2 : vector<8x128xf32>
    %c1 = arith.constant 1 : index
    %c0_2 = arith.constant 0 : index
    %c0_3 = arith.constant 0 : index
    %4 = vector.load %arg1[%c1, %c0_2, %c0_3] : memref<3x8x128xf32, #tpu.memory_space<vmem>>, vector<1x8x128xf32>
    %5 = vector.shape_cast %4 : vector<1x8x128xf32> to vector<8x128xf32>
    %cst_4 = arith.constant 1.000000e+00 : f32
    %6 = vector.broadcast %cst_4 : f32 to vector<8x128xf32>
    %7 = arith.mulf %5, %6 : vector<8x128xf32>
    %c2 = arith.constant 2 : index
    %c0_5 = arith.constant 0 : index
    %c0_6 = arith.constant 0 : index
    %8 = vector.load %arg1[%c2, %c0_5, %c0_6] : memref<3x8x128xf32, #tpu.memory_space<vmem>>, vector<1x8x128xf32>
    %9 = vector.shape_cast %8 : vector<1x8x128xf32> to vector<8x128xf32>
    %cst_7 = arith.constant 1.000000e-01 : f32
    %10 = vector.broadcast %cst_7 : f32 to vector<8x128xf32>
    %11 = arith.mulf %9, %10 : vector<8x128xf32>
    %12 = arith.mulf %11, %11 : vector<8x128xf32>
    %13 = math.absf %11 : vector<8x128xf32>
    %cst_8 = arith.constant 9.99999974E-6 : f32
    %14 = vector.broadcast %cst_8 : f32 to vector<8x128xf32>
    %15 = arith.addf %12, %14 : vector<8x128xf32>
    %cst_9 = arith.constant 1.000000e+00 : f32
    %16 = vector.broadcast %cst_9 : f32 to vector<8x128xf32>
    %17 = arith.divf %16, %15 : vector<8x128xf32>
    %18 = math.sin %13 : vector<8x128xf32>
    %cst_10 = arith.constant 9.99999974E-6 : f32
    %19 = vector.broadcast %cst_10 : f32 to vector<8x128xf32>
    %20 = arith.addf %13, %19 : vector<8x128xf32>
    %21 = arith.divf %18, %20 : vector<8x128xf32>
    %22 = math.cos %13 : vector<8x128xf32>
    %cst_11 = arith.constant 1.000000e+00 : f32
    %23 = vector.broadcast %cst_11 : f32 to vector<8x128xf32>
    %24 = arith.subf %23, %22 : vector<8x128xf32>
    %25 = arith.mulf %24, %17 : vector<8x128xf32>
    %cst_12 = arith.constant 1.000000e+00 : f32
    %26 = vector.broadcast %cst_12 : f32 to vector<8x128xf32>
    %27 = arith.subf %26, %21 : vector<8x128xf32>
    %28 = arith.mulf %27, %17 : vector<8x128xf32>
    %29 = arith.mulf %25, %12 : vector<8x128xf32>
    %cst_13 = arith.constant 1.000000e+00 : f32
    %30 = vector.broadcast %cst_13 : f32 to vector<8x128xf32>
    %31 = arith.subf %30, %29 : vector<8x128xf32>
    %32 = arith.mulf %21, %11 : vector<8x128xf32>
    %33 = arith.mulf %28, %12 : vector<8x128xf32>
    %cst_14 = arith.constant 1.000000e+00 : f32
    %34 = vector.broadcast %cst_14 : f32 to vector<8x128xf32>
    %35 = arith.subf %34, %33 : vector<8x128xf32>
    %36 = arith.mulf %25, %11 : vector<8x128xf32>
    %37 = arith.mulf %35, %3 : vector<8x128xf32>
    %38 = arith.mulf %36, %7 : vector<8x128xf32>
    %39 = arith.subf %37, %38 : vector<8x128xf32>
    %40 = arith.mulf %36, %3 : vector<8x128xf32>
    %41 = arith.mulf %35, %7 : vector<8x128xf32>
    %42 = arith.addf %40, %41 : vector<8x128xf32>
    %c0_15 = arith.constant 0 : index
    %c0_16 = arith.constant 0 : index
    %c0_17 = arith.constant 0 : index
    %43 = vector.load %arg2[%c0_15, %c0_16, %c0_17] : memref<4x8x128xf32, #tpu.memory_space<vmem>>, vector<1x8x128xf32>
    %44 = vector.shape_cast %43 : vector<1x8x128xf32> to vector<8x128xf32>
    %45 = vector.shape_cast %31 : vector<8x128xf32> to vector<1x8x128xf32>
    tpu.vector_store %arg2[%c0_15, %c0_16, %c0_17], %45 {strides = array<i32>} : memref<4x8x128xf32, #tpu.memory_space<vmem>>, vector<1x8x128xf32>,
    %c1_18 = arith.constant 1 : index
    %c0_19 = arith.constant 0 : index
    %c0_20 = arith.constant 0 : index
    %46 = vector.load %arg2[%c1_18, %c0_19, %c0_20] : memref<4x8x128xf32, #tpu.memory_space<vmem>>, vector<1x8x128xf32>
    %47 = vector.shape_cast %46 : vector<1x8x128xf32> to vector<8x128xf32>
    %48 = vector.shape_cast %32 : vector<8x128xf32> to vector<1x8x128xf32>
    tpu.vector_store %arg2[%c1_18, %c0_19, %c0_20], %48 {strides = array<i32>} : memref<4x8x128xf32, #tpu.memory_space<vmem>>, vector<1x8x128xf32>,
    %c2_21 = arith.constant 2 : index
    %c0_22 = arith.constant 0 : index
    %c0_23 = arith.constant 0 : index
    %49 = vector.load %arg2[%c2_21, %c0_22, %c0_23] : memref<4x8x128xf32, #tpu.memory_space<vmem>>, vector<1x8x128xf32>
    %50 = vector.shape_cast %49 : vector<1x8x128xf32> to vector<8x128xf32>
    %51 = vector.shape_cast %39 : vector<8x128xf32> to vector<1x8x128xf32>
    tpu.vector_store %arg2[%c2_21, %c0_22, %c0_23], %51 {strides = array<i32>} : memref<4x8x128xf32, #tpu.memory_space<vmem>>, vector<1x8x128xf32>,
    %c3 = arith.constant 3 : index
    %c0_24 = arith.constant 0 : index
    %c0_25 = arith.constant 0 : index
    %52 = vector.load %arg2[%c3, %c0_24, %c0_25] : memref<4x8x128xf32, #tpu.memory_space<vmem>>, vector<1x8x128xf32>
    %53 = vector.shape_cast %52 : vector<1x8x128xf32> to vector<8x128xf32>
    %54 = vector.shape_cast %42 : vector<8x128xf32> to vector<1x8x128xf32>
    tpu.vector_store %arg2[%c3, %c0_24, %c0_25], %54 {strides = array<i32>} : memref<4x8x128xf32, #tpu.memory_space<vmem>>, vector<1x8x128xf32>,
    return
  }
  func.func @transform_0(%arg0: i32) -> (i32, i32, i32) {
    %c0_i32 = arith.constant 0 : i32
    %c0_i32_0 = arith.constant 0 : i32
    %c0_i32_1 = arith.constant 0 : i32
    return %c0_i32, %arg0, %c0_i32_0 : i32, i32, i32
  }
  func.func @transform_1(%arg0: i32) -> (i32, i32, i32) {
    %c0_i32 = arith.constant 0 : i32
    %c0_i32_0 = arith.constant 0 : i32
    %c0_i32_1 = arith.constant 0 : i32
    return %c0_i32, %arg0, %c0_i32_0 : i32, i32, i32
  }
}

</mosaic_0001>

<bundles_post_ra>
// kernel: tpu_custom_call.1
= control target key start
LH: loop header
LB: loop body
LE: loop exit
PB: predicated region body
PF: predicated region fallthrough
CT: control target
= control target key end

     0   :  { %6 = vsyncpa [#allocation3], 0  ;;  %s431_s0 = inlined_call_operand.hbm [shape: f32[3,8,128], index: 0, kind: input, shape index: {}]   ;;  %s432_s1 = inlined_call_operand.hbm [shape: f32[4,8,128], index: 1, kind: output, shape index: {}]  }
   0x1   :  { %7 = vsyncpa [#allocation4], 0  ;;  %s356_s6 = smov [#allocation2]   ;;  %s308_s10 = scalar_lea.hbm %s431_s0, 384 }
   0x2   :  { %s13_s7 = sshll.u32 %s356_s6, 4  ;;  %p309_p0 = scmp.ne.s32.totalorder %s431_s0, %s308_s10  ;;  %s14_s7 = int_to_ptr.vmem [resolvable:$true] %s13_s7 }
   0x3   :  { %p312_p1 = scmp.lt.u32.totalorder %s308_s10, %s431_s0 }
   0x5   :  { %p314_p2 = pnand %p312_p1, %p309_p0 }
   0x7   :  { %317 = shalt.err (!%p314_p2)
}
   0x8   :  { %s318_s15 = scalar_lea.vmem %s14_s7, 384  ;;  %p323_p4 = scmp.lt.s32.totalorder %s14_s7, %s14_s7 }
   0x9   :  { %p319_p3 = scmp.ne.s32.totalorder %s14_s7, %s318_s15  ;;  %p324_p5 = scmp.lt.s32.totalorder %s318_s15, %s318_s15 }
   0xb   :  { %p325_p6 = por %p324_p5, %p323_p4 }
   0xd   :  { %p326_p7 = pnand %p325_p6, %p319_p3 }
   0xf   :  { %329 = shalt.err (!%p326_p7)
}
  0x10   :  { %s357_s16 = smov 128   ;;  %s358_s17 = smov 8  }
  0x11   :  { %19 = dma.hbm_to_vmem [thread:$0]  %s431_s0, 384, %s14_s7, [#allocation3], %s357_s16, %s357_s16, %s358_s17  }
  0x12   :  { %352 = dma.done.wait [#allocation3], 384  }
  0x13   :  { %353 = vsyncadd [#allocation3], 4294966912  ;;  %v27_v0 = vld [vmem:[#allocation2 + $0x10] sm:$0xff]  ;;  %v359_v13 = vmov 683565275   ;;  %s365_s0 = smov [#allocation5]  }
  0x14   :  { %v391_v1 = vmul.f32 0.1, %v27_v0  ;;  %v360_v15 = vmov 2475754826   ;;  %v361_v17 = vmov 2131351028  }
  0x15   :  { %v362_v19 = vmov 2102212464   ;;  %v363_v21 = vmov 920167782   ;;  %v364_v28 = vmov 1326507024  }
  0x16   :  { %v394_v2 = vand.u32 2147483647, %v391_v1  ;;  %s266_s20 = sshll.u32 %s365_s0, 4  ;;  %s267_s20 = int_to_ptr.vmem [resolvable:$true] %s266_s20 }
  0x17   :  { %s330_s21 = scalar_lea.vmem %s267_s20, 512  ;;  %p335_p9 = scmp.lt.s32.totalorder %s267_s20, %s267_s20 }
  0x18   :  { %v36_v3 = vand.u32 2139095040, %v394_v2  ;;  %v40_v7 = vand.u32 8388607, %v394_v2  ;;  %vm35_vm7 = vcmp.le.f32.partialorder %v394_v2, 0.7853982  ;;  %vm123_vm14 = vweird.f32 %v394_v2  ;;  %p331_p8 = scmp.ne.s32.totalorder %s267_s20, %s330_s21  ;;  %p336_p10 = scmp.lt.s32.totalorder %s330_s21, %s330_s21 }
  0x1a   :  { %v37_v4 = vshrl.u32 %v36_v3, 23  ;;  %v41_v10 = vor.u32 8388608, %v40_v7  ;;  %p337_p11 = por %p336_p10, %p335_p9 }
  0x1c   :  { %v278_v5 = vadd.s32 4294967169, %v37_v4  ;;  %v81_v30 = vshll.u32 %v41_v10, 8  ;;  %p338_p12 = pnand %p337_p11, %p331_p8 }
  0x1e   :  { %v43_v6 = vadd.s32 1, %v278_v5 }
  0x20   :  { %vm44_vm0 = vcmp.gt.s32.totalorder %v43_v6, 0 }
  0x21   :  { %v45_v8 = vsel %vm44_vm0, %v43_v6, 0 }
  0x22   :  { %v47_v9 = vand.u32 31, %v45_v8  ;;  %v46_v11 = vshrl.u32 %v45_v8, 5 }
  0x24   :  { %v48_v12 = vsub.s32 32, %v47_v9  ;;  %v50_v14 = vshll.u32 %v359_v13, %v47_v9  ;;  %v53_v16 = vshll.u32 %v360_v15, %v47_v9  ;;  %v56_v18 = vshll.u32 %v361_v17, %v47_v9 }
  0x25   :  { %v59_v20 = vshll.u32 %v362_v19, %v47_v9  ;;  %v62_v22 = vshll.u32 %v363_v21, %v47_v9  ;;  %vm65_vm1 = vcmp.lt.s32.totalorder %v46_v11, 1  ;;  %vm68_vm2 = vcmp.lt.s32.totalorder %v46_v11, 4 }
  0x26   :  { %v49_v23 = vshrl.u32 %v359_v13, %v48_v12  ;;  %v51_v24 = vshrl.u32 %v360_v15, %v48_v12  ;;  %v54_v25 = vshrl.u32 %v361_v17, %v48_v12  ;;  %v57_v26 = vshrl.u32 %v362_v19, %v48_v12 }
  0x27   :  { %v60_v27 = vshrl.u32 %v363_v21, %v48_v12  ;;  %v63_v29 = vshrl.u32 %v364_v28, %v48_v12  ;;  %vm66_vm3 = vcmp.lt.s32.totalorder %v46_v11, 2  ;;  %vm67_vm4 = vcmp.lt.s32.totalorder %v46_v11, 3 }
  0x28   :  { %v52_v31 = vor.u32 %v51_v24, %v50_v14  ;;  %v55_v32 = vor.u32 %v54_v25, %v53_v16  ;;  %v58_v33 = vor.u32 %v57_v26, %v56_v18  ;;  %v29_v17 = vmul.f32 %v391_v1, %v391_v1 }
  0x29   :  { %v61_v34 = vor.u32 %v60_v27, %v59_v20  ;;  %v64_v35 = vor.u32 %v63_v29, %v62_v22  ;;  %v135_v18 = vadd.f32 1e-05, %v394_v2 }
  0x2a   :  { %v69_v36 = vsel %vm65_vm1, %v49_v23, %v52_v31  ;;  %v70_v37 = vsel %vm68_vm2, %v58_v33, 2102212464  ;;  %v73_v38 = vsel %vm65_vm1, %v52_v31, %v55_v32  ;;  %v77_v39 = vsel %vm65_vm1, %v55_v32, %v58_v33 }
  0x2b   :  { %v71_v40 = vsel %vm67_vm4, %v55_v32, %v70_v37  ;;  %v74_v41 = vsel %vm68_vm2, %v61_v34, 920167782  ;;  %v78_v42 = vsel %vm68_vm2, %v64_v35, 1326507024  ;;  %v31_v20 = vadd.f32 1e-05, %v29_v17 }
  0x2c   :  { %v75_v43 = vsel %vm67_vm4, %v58_v33, %v74_v41  ;;  %v79_v44 = vsel %vm67_vm4, %v61_v34, %v78_v42  ;;  %v72_v45 = vsel %vm66_vm3, %v69_v36, %v71_v40 }
  0x2d   :  { %v76_v46 = vsel %vm66_vm3, %v73_v38, %v75_v43  ;;  %v80_v47 = vsel %vm66_vm3, %v77_v39, %v79_v44  ;;  %v88_v52 = vmul.u32 %v81_v30, %v72_v45  ;;  %v23_v44 = vld [vmem:[#allocation2] sm:$0xff]  ;;  %v25_v45 = vld [vmem:[#allocation2 + $0x8] sm:$0xff] }
  0x2e   :  { %v398_v48 = vmul.u32.u64.low %v81_v30, %v80_v47  ;;  %v399_v49 = vmul.u32.u64.high %v81_v30, %v80_v47, %v398_v48  ;;  %v401_v50 = vmul.u32.u64.low %v81_v30, %v76_v46  ;;  %v402_v51 = vmul.u32.u64.high %v81_v30, %v76_v46, %v401_v50 }
  0x30   :  { %vm90_vm5 = vc.u32 %v399_v49, %v401_v50  ;;  %v91_v53 = vadd.s32 1, %v402_v51  ;;  %v89_v0 = vadd.s32 %v401_v50, %v399_v49 }
  0x32   :  { %v92_v54 = vsel %vm90_vm5, %v91_v53, %v402_v51 }
  0x33   :  { %v93_v55 = vadd.s32 %v92_v54, %v88_v52 }
  0x35   :  { %v94_v56 = vadd.s32 536870912, %v93_v55 }
  0x37   :  { %v95_v57 = vshrl.u32 %v94_v56, 30 }
  0x39   :  { %v96_v58 = vshll.u32 %v95_v57, 30  ;;  %v120_v16 = vsel %vm35_vm7, 0, %v95_v57 }
  0x3a   :  { %v124_v19 = vadd.s32 3, %v120_v16  ;;  %v228_v21 = vand.u32 3, %v120_v16 }
  0x3b   :  { %v97_v59 = vsub.s32 %v93_v55, %v96_v58 }
  0x3c   :  { %v125_v22 = vand.u32 3, %v124_v19  ;;  %vm233_vm8 = vcmp.eq.s32.totalorder %v228_v21, 2  ;;  %vm230_vm10 = vcmp.eq.s32.totalorder %v228_v21, 0  ;;  %vm229_vm12 = vcmp.lt.s32.totalorder %v228_v21, 2 }
  0x3d   :  { %v99_v60 = vsub.s32 0, %v97_v59 }
  0x3e   :  { %vm130_vm9 = vcmp.eq.s32.totalorder %v125_v22, 2  ;;  %vm127_vm11 = vcmp.eq.s32.totalorder %v125_v22, 0  ;;  %vm126_vm13 = vcmp.lt.s32.totalorder %v125_v22, 2 }
  0x3f   :  { %v279_v61 = vmin.u32 %v99_v60, %v97_v59 }
  0x41   :  { %v101_v62 = vclz %v279_v61 }
  0x43   :  { %v280_v63 = vadd.s32 4294967294, %v101_v62 }
  0x45   :  { %vm281_vm6 = vcmp.lt.s32.totalorder %v280_v63, 0 }
  0x46   :  { %v104_v3 = vsel %vm281_vm6, 0, %v280_v63 }
  0x47   :  { %v105_v4 = vsub.s32 32, %v104_v3  ;;  %v106_v5 = vshll.u32 %v97_v59, %v104_v3  ;;  %v109_v6 = vsub.s32 4294967266, %v104_v3 }
  0x49   :  { %v107_v7 = vshrl.u32 %v89_v0, %v105_v4  ;;  %v110_v8 = vadd.s32 127, %v109_v6 }
  0x4b   :  { %v108_v9 = vor.u32 %v107_v7, %v106_v5  ;;  %v111_v10 = vshll.u32 %v110_v8, 23 }
  0x4d   :  { %v112_v11 = vor.u32 4788187, %v111_v10  ;;  %v115_v12 = vcvt.s32.f32 %v108_v9 }
  0x4f   :  { %v113_v13 = vand.u32 2147483647, %v112_v11 }
  0x51   :  { %v116_v14 = vmul.f32 %v115_v12, %v113_v13 }
  0x53   :  { %v119_v15 = vsel %vm35_vm7, %v394_v2, %v116_v14 }
  0x54   :  { %300 = vcosq.f32 %v119_v15 }
  0x55   :  { %302 = vsinq.f32 %v119_v15 }
  0x56   :  { %304 = vrcp.f32 %v135_v18 }
  0x57   :  { %306 = vrcp.f32 %v31_v20 }
  0x5e   :  { %v301_v23 = vpop.eup %300 }
  0x5f   :  { %v303_v24 = vpop.eup %302  ;;  %v131_v25 = vxor.u32 2147483648, %v301_v23 }
  0x60   :  { %v128_v26 = vxor.u32 2147483648, %v303_v24  ;;  %v305_v29 = vpop.eup %304 }
  0x61   :  { %v235_v27 = vsel %vm233_vm8, %v131_v25, %v303_v24  ;;  %v132_v28 = vsel %vm130_vm9, %v131_v25, %v303_v24  ;;  %v307_v38 = vpop.eup %306 }
  0x62   :  { %v232_v30 = vsel %vm230_vm10, %v301_v23, %v128_v26  ;;  %v129_v31 = vsel %vm127_vm11, %v301_v23, %v128_v26 }
  0x63   :  { %v236_v32 = vsel %vm229_vm12, %v232_v30, %v235_v27  ;;  %v133_v33 = vsel %vm126_vm13, %v129_v31, %v132_v28 }
  0x64   :  { %v237_v34 = vsel %vm123_vm14, nan, %v236_v32  ;;  %v134_v35 = vsel %vm123_vm14, nan, %v133_v33 }
  0x65   :  { %v238_v36 = vsub.f32 1.0, %v237_v34  ;;  %v137_v37 = vmul.f32 %v305_v29, %v134_v35 }
  0x67   :  { %v239_v39 = vmul.f32 %v307_v38, %v238_v36  ;;  %v240_v40 = vsub.f32 1.0, %v137_v37  ;;  %v244_v41 = vmul.f32 %v137_v37, %v391_v1 }
  0x69   :  { %v242_v42 = vmul.f32 %v239_v39, %v29_v17  ;;  %v241_v43 = vmul.f32 %v307_v38, %v240_v40  ;;  %256 = vst [vmem:[#allocation5 + $0x8] sm:$0xff] %v244_v41  ;;  %v247_v2 = vmul.f32 %v239_v39, %v391_v1 }
  0x6b   :  { %v243_v46 = vsub.f32 1.0, %v242_v42  ;;  %v245_v47 = vmul.f32 %v241_v43, %v29_v17  ;;  %v249_v49 = vmul.f32 %v247_v2, %v25_v45  ;;  %v251_v50 = vmul.f32 %v247_v2, %v23_v44 }
  0x6d   :  { %254 = vst [vmem:[#allocation5] sm:$0xff] %v243_v46  ;;  %v246_v48 = vsub.f32 1.0, %v245_v47 }
  0x6f   :  { %v248_v51 = vmul.f32 %v246_v48, %v23_v44  ;;  %v252_v52 = vmul.f32 %v246_v48, %v25_v45 }
  0x71   :  { %v250_v53 = vsub.f32 %v248_v51, %v249_v49  ;;  %v253_v54 = vadd.f32 %v252_v52, %v251_v50 }
  0x73   :  { %258 = vst [vmem:[#allocation5 + $0x10] sm:$0xff] %v250_v53  ;;  %260 = vst [vmem:[#allocation5 + $0x18] sm:$0xff] %v253_v54 }
  0x74   :  { %341 = shalt.err (!%p338_p12)
}
  0x75   :  { %s342_s24 = scalar_lea.hbm %s432_s1, 512 }
  0x76   :  { %p343_p13 = scmp.ne.s32.totalorder %s432_s1, %s342_s24  ;;  %p346_p0 = scmp.lt.u32.totalorder %s342_s24, %s432_s1 }
  0x78   :  { %p348_p1 = pnand %p346_p0, %p343_p13 }
  0x7a   :  { %351 = shalt.err (!%p348_p1)
}
  0x7b   :  { %272 = dma.vmem_to_hbm [thread:$0]  %s267_s20, 512, %s432_s1, [#allocation4], %s357_s16, %s357_s16, %s358_s17  }
  0x7c   :  { %354 = dma.done.wait [#allocation4], 512  }
  0x7d   :  { %355 = vsyncadd [#allocation4], 4294966784 }
  0x7e   :  { %276 = vsyncpa [#allocation3], 1 }
  0x7f   :  { %277 = vsyncpa [#allocation4], 1 }

</bundles_post_ra>
